<compile_context>
chip_gen: v5e
topology: v5e:2x2
jax: 0.10.0
libtpu: 0.0.40
codegen_flags: <defaults>
</compile_context>

<pallas_src>
import functools

import jax
import jax.numpy as jnp
from jax.experimental import pallas as pl
from jax.experimental.pallas import tpu as pltpu

MARGIN = 1.0
EPS = 1e-6  # torch.nn.PairwiseDistance default eps (added to the difference)

# Per-input-stream, per-grid-step DMA byte targets (review: 2-4 MiB/stream is the
# sweet spot; saturates HBM BW while leaving VMEM headroom and many grid steps).
_TARGET_STREAM_TILE_BYTES = 2 << 20
_MAX_STREAM_TILE_BYTES = 4 << 20


def _vmem_capacity_bytes() -> int:
    try:
        return int(pltpu.get_tpu_info().vmem_capacity_bytes)
    except Exception:
        return 64 << 20  # conservative (v7x-sized) fallback


def _pick_tiles(B: int, D: int, itemsize: int):
    """Pick (tile_b, tile_d) so per-step stream bytes land in the 2-4 MiB sweet spot."""
    mult_b = 8 if itemsize >= 4 else 16  # f32 sublane=8; bf16 packs 16 rows/vreg

    # Feature (lane) tiling only when even the minimum-height batch tile of a
    # full-D block would blow the per-step DMA budget (very large embeddings).
    if D * itemsize * mult_b <= _MAX_STREAM_TILE_BYTES:
        tile_d = D  # full feature dim in one block (allowed even if D % 128 != 0)
    else:
        tile_d = max(128, min(4096, (D // 128) * 128))  # 128-lane multiples

    rows = _TARGET_STREAM_TILE_BYTES // max(tile_d * itemsize, 1)
    tile_b = max(mult_b, (rows // mult_b) * mult_b)

    # v7x megacore: keep >= 4 batch tiles when the batch is big enough so the
    # "parallel" batch axis actually spreads across both TensorCores.
    if B >= 4 * mult_b:
        cap = max(mult_b, ((B // 4) // mult_b) * mult_b)
        tile_b = min(tile_b, cap)

    b_pad = ((B + mult_b - 1) // mult_b) * mult_b
    tile_b = int(min(tile_b, b_pad))
    return tile_b, int(tile_d)


def _make_kernel(B: int, D: int, tile_b: int, tile_d: int, margin: float, eps: float):
    num_d = -(-D // tile_d)
    mask_rows = (B % tile_b) != 0
    mask_cols = (D % tile_d) != 0

    def kernel(a_ref, p_ref, n_ref, out_ref, pos_acc, neg_acc):
        i = pl.program_id(0)  # batch tile  ("parallel")
        j = pl.program_id(1)  # feature tile ("arbitrary", innermost reduction)

        @pl.when(j == 0)
        def _():
            pos_acc[...] = jnp.zeros_like(pos_acc)
            neg_acc[...] = jnp.zeros_like(neg_acc)

        a = a_ref[...].astype(jnp.float32)
        # PairwiseDistance(p=2): eps is added to the difference, element-wise.
        dp = a - p_ref[...].astype(jnp.float32) + eps
        dn = a - n_ref[...].astype(jnp.float32) + eps

        if mask_cols:
            # Last feature tile is padded past D: select (not multiply) so padding
            # garbage / the extra eps^2 never enters the squared sums.
            col = jax.lax.broadcasted_iota(jnp.int32, (tile_b, tile_d), 1)
            valid_col = (j * tile_d + col) < D
            dp = jnp.where(valid_col, dp, 0.0)
            dn = jnp.where(valid_col, dn, 0.0)

        pos_acc[...] += jnp.sum(dp * dp, axis=-1, keepdims=True)  # (tile_b, 1)
        neg_acc[...] += jnp.sum(dn * dn, axis=-1, keepdims=True)

        @pl.when(j == num_d - 1)
        def _():
            dpos = jnp.sqrt(pos_acc[...])
            dneg = jnp.sqrt(neg_acc[...])
            losses = jnp.maximum(margin + dpos - dneg, 0.0)  # relu
            if mask_rows:
                # Padded rows of the last batch tile hold undefined data; the
                # select keeps NaN/inf out of the sum (do NOT turn into a multiply).
                row = jax.lax.broadcasted_iota(jnp.int32, (tile_b, 1), 0)
                losses = jnp.where(row < (B - i * tile_b), losses, 0.0)
            partial = jnp.sum(losses)  # scalar partial for this batch tile
            # Lane-dense (1, 8, 128) block -> unmasked vector stores; one private
            # block per batch tile keeps the batch axis megacore-safe.
            out_ref[...] = jnp.full(out_ref.shape, partial, dtype=jnp.float32)

    return kernel


@functools.partial(jax.jit, static_argnames=("margin", "eps"))
def triplet_loss(anchor, positive, negative, margin=MARGIN, eps=EPS):
    """anchor/positive/negative: (B, D) float arrays. Returns scalar float32."""
    B, D = anchor.shape
    itemsize = jnp.dtype(anchor.dtype).itemsize

    tile_b, tile_d = _pick_tiles(B, D, itemsize)
    num_b = -(-B // tile_b)
    num_d = -(-D // tile_d)

    # Scoped-VMEM limit: double-buffered input streams + in-kernel f32 upcast /
    # diff temporaries + accumulators (lane-padded) + output, plus slack.
    vmem_cap = _vmem_capacity_bytes()
    in_bytes = 2 * 3 * tile_b * tile_d * itemsize          # 2 buffers x 3 streams
    tmp_bytes = 4 * tile_b * tile_d * 4                    # f32 upcasts + working set
    acc_bytes = 2 * tile_b * 128 * 4                       # (tile_b,1) pads to 128 lanes
    out_bytes = 2 * 8 * 128 * 4
    vmem_limit = in_bytes + tmp_bytes + acc_bytes + out_bytes + (4 << 20)
    vmem_limit = int(min(max(vmem_limit, 16 << 20), int(vmem_cap * 0.8)))

    cost = pl.CostEstimate(
        flops=10 * B * D,
        transcendentals=2 * B,  # two sqrt per row
        bytes_accessed=3 * B * D * itemsize + num_b * 8 * 128 * 4,
    )

    partials = pl.pallas_call(
        _make_kernel(B, D, tile_b, tile_d, float(margin), float(eps)),
        out_shape=jax.ShapeDtypeStruct((num_b, 8, 128), jnp.float32),
        grid_spec=pltpu.PrefetchScalarGridSpec(
            num_scalar_prefetch=0,
            grid=(num_b, num_d),  # reduction (feature) axis last
            in_specs=[
                pl.BlockSpec((tile_b, tile_d), lambda i, j: (i, j)),
                pl.BlockSpec((tile_b, tile_d), lambda i, j: (i, j)),
                pl.BlockSpec((tile_b, tile_d), lambda i, j: (i, j)),
            ],
            out_specs=pl.BlockSpec((1, 8, 128), lambda i, j: (i, 0, 0)),
            scratch_shapes=[
                pltpu.VMEM((tile_b, 1), jnp.float32),  # pos squared-sum accumulator
                pltpu.VMEM((tile_b, 1), jnp.float32),  # neg squared-sum accumulator
            ],
        ),
        compiler_params=pltpu.CompilerParams(
            dimension_semantics=("parallel", "arbitrary"),
            vmem_limit_bytes=vmem_limit,
        ),
        cost_estimate=cost,
    )(anchor, positive, negative)

    # Tiny finalization in plain XLA: sum of per-tile partials / true batch size.
    return jnp.sum(partials[:, 0, 0]) / B


def _reference(anchor, positive, negative, margin=MARGIN, eps=EPS):
    dpos = jnp.sqrt(jnp.sum((anchor - positive + eps) ** 2, axis=-1))
    dneg = jnp.sqrt(jnp.sum((anchor - negative + eps) ** 2, axis=-1))
    return jnp.mean(jnp.maximum(margin + dpos - dneg, 0.0))


if __name__ == "__main__":
    key = jax.random.PRNGKey(0)
    k1, k2, k3 = jax.random.split(key, 3)

    # Small embedding batch; D=128 aligns with the lane width.
    B, D = 8, 128
    anchor = jax.random.normal(k1, (B, D), dtype=jnp.float32)
    positive = jax.random.normal(k2, (B, D), dtype=jnp.float32)
    negative = jax.random.normal(k3, (B, D), dtype=jnp.float32)

    loss = triplet_loss(anchor, positive, negative)
    jax.block_until_ready(loss)
    ref = _reference(anchor, positive, negative)
    assert jnp.allclose(loss, ref, rtol=1e-5, atol=1e-5), (loss, ref)

    # Ragged batch tail + non-128-multiple feature dim exercise the mask paths.
    B2, D2 = 6, 200
    a2 = jax.random.normal(k1, (B2, D2), dtype=jnp.float32)
    p2 = jax.random.normal(k2, (B2, D2), dtype=jnp.float32)
    n2 = jax.random.normal(k3, (B2, D2), dtype=jnp.float32)
    loss2 = triplet_loss(a2, p2, n2)
    jax.block_until_ready(loss2)
    ref2 = _reference(a2, p2, n2)
    assert jnp.allclose(loss2, ref2, rtol=1e-5, atol=1e-5), (loss2, ref2)

    print("KERNEL_OK")
</pallas_src>

<mosaic_0001>
module attributes {stable_mosaic.version = 11 : i64} {
  func.func @kernel(%arg0: i32, %arg1: i32, %arg2: memref<8x128xf32, #tpu.memory_space<vmem>>, %arg3: memref<8x128xf32, #tpu.memory_space<vmem>>, %arg4: memref<8x128xf32, #tpu.memory_space<vmem>>, %arg5: memref<1x8x128xf32, #tpu.memory_space<vmem>>, %arg6: memref<8x1xf32, #tpu.memory_space<vmem>>, %arg7: memref<8x1xf32, #tpu.memory_space<vmem>>) attributes {dimension_semantics = [#tpu.dimension_semantics<parallel>, #tpu.dimension_semantics<arbitrary>], iteration_bounds = array<i64: 1, 1>, scalar_prefetch = 0 : i64, scratch_operands = 2 : i64, tpu.core_type = #tpu.core_type<tc>, window_params = [{transform_indices = @transform_0, window_bounds = array<i64: 8, 128>}, {transform_indices = @transform_1, window_bounds = array<i64: 8, 128>}, {transform_indices = @transform_2, window_bounds = array<i64: 8, 128>}, {transform_indices = @transform_3, window_bounds = array<i64: 1, 8, 128>}]} {
    %c0_i32 = arith.constant 0 : i32
    %0 = arith.cmpi eq, %arg1, %c0_i32 : i32
    %1 = arith.extui %0 : i1 to i32
    %c0_i32_0 = arith.constant 0 : i32
    %2 = arith.cmpi ne, %1, %c0_i32_0 : i32
    scf.if %2 {
      %cst_19 = arith.constant 0.000000e+00 : f32
      %27 = vector.broadcast %cst_19 : f32 to vector<8x1xf32>
      %c0_20 = arith.constant 0 : index
      %c0_21 = arith.constant 0 : index
      %28 = vector.load %arg6[%c0_20, %c0_21] : memref<8x1xf32, #tpu.memory_space<vmem>>, vector<8x1xf32>
      tpu.vector_store %arg6[%c0_20, %c0_21], %27 {strides = array<i32>} : memref<8x1xf32, #tpu.memory_space<vmem>>, vector<8x1xf32>,
      %cst_22 = arith.constant 0.000000e+00 : f32
      %29 = vector.broadcast %cst_22 : f32 to vector<8x1xf32>
      %c0_23 = arith.constant 0 : index
      %c0_24 = arith.constant 0 : index
      %30 = vector.load %arg7[%c0_23, %c0_24] : memref<8x1xf32, #tpu.memory_space<vmem>>, vector<8x1xf32>
      tpu.vector_store %arg7[%c0_23, %c0_24], %29 {strides = array<i32>} : memref<8x1xf32, #tpu.memory_space<vmem>>, vector<8x1xf32>,
    } else {
    }
    %c0 = arith.constant 0 : index
    %c0_1 = arith.constant 0 : index
    %3 = vector.load %arg2[%c0, %c0_1] : memref<8x128xf32, #tpu.memory_space<vmem>>, vector<8x128xf32>
    %c0_2 = arith.constant 0 : index
    %c0_3 = arith.constant 0 : index
    %4 = vector.load %arg3[%c0_2, %c0_3] : memref<8x128xf32, #tpu.memory_space<vmem>>, vector<8x128xf32>
    %5 = arith.subf %3, %4 : vector<8x128xf32>
    %cst = arith.constant 9.99999997E-7 : f32
    %6 = vector.broadcast %cst : f32 to vector<8x128xf32>
    %7 = arith.addf %5, %6 : vector<8x128xf32>
    %c0_4 = arith.constant 0 : index
    %c0_5 = arith.constant 0 : index
    %8 = vector.load %arg4[%c0_4, %c0_5] : memref<8x128xf32, #tpu.memory_space<vmem>>, vector<8x128xf32>
    %9 = arith.subf %3, %8 : vector<8x128xf32>
    %cst_6 = arith.constant 9.99999997E-7 : f32
    %10 = vector.broadcast %cst_6 : f32 to vector<8x128xf32>
    %11 = arith.addf %9, %10 : vector<8x128xf32>
    %c0_7 = arith.constant 0 : index
    %c0_8 = arith.constant 0 : index
    %12 = vector.load %arg6[%c0_7, %c0_8] : memref<8x1xf32, #tpu.memory_space<vmem>>, vector<8x1xf32>
    %13 = arith.mulf %7, %7 : vector<8x128xf32>
    %cst_9 = arith.constant dense<0.000000e+00> : vector<8xf32>
    %14 = vector.multi_reduction <add>, %13, %cst_9 [1] : vector<8x128xf32> to vector<8xf32>
    %15 = vector.shape_cast %14 : vector<8xf32> to vector<8x1xf32>
    %16 = arith.addf %12, %15 : vector<8x1xf32>
    %c0_10 = arith.constant 0 : index
    %c0_11 = arith.constant 0 : index
    %17 = vector.load %arg6[%c0_10, %c0_11] : memref<8x1xf32, #tpu.memory_space<vmem>>, vector<8x1xf32>
    tpu.vector_store %arg6[%c0_10, %c0_11], %16 {strides = array<i32>} : memref<8x1xf32, #tpu.memory_space<vmem>>, vector<8x1xf32>,
    %c0_12 = arith.constant 0 : index
    %c0_13 = arith.constant 0 : index
    %18 = vector.load %arg7[%c0_12, %c0_13] : memref<8x1xf32, #tpu.memory_space<vmem>>, vector<8x1xf32>
    %19 = arith.mulf %11, %11 : vector<8x128xf32>
    %cst_14 = arith.constant dense<0.000000e+00> : vector<8xf32>
    %20 = vector.multi_reduction <add>, %19, %cst_14 [1] : vector<8x128xf32> to vector<8xf32>
    %21 = vector.shape_cast %20 : vector<8xf32> to vector<8x1xf32>
    %22 = arith.addf %18, %21 : vector<8x1xf32>
    %c0_15 = arith.constant 0 : index
    %c0_16 = arith.constant 0 : index
    %23 = vector.load %arg7[%c0_15, %c0_16] : memref<8x1xf32, #tpu.memory_space<vmem>>, vector<8x1xf32>
    tpu.vector_store %arg7[%c0_15, %c0_16], %22 {strides = array<i32>} : memref<8x1xf32, #tpu.memory_space<vmem>>, vector<8x1xf32>,
    %c0_i32_17 = arith.constant 0 : i32
    %24 = arith.cmpi eq, %arg1, %c0_i32_17 : i32
    %25 = arith.extui %24 : i1 to i32
    %c0_i32_18 = arith.constant 0 : i32
    %26 = arith.cmpi ne, %25, %c0_i32_18 : i32
    scf.if %26 {
      %c0_19 = arith.constant 0 : index
      %c0_20 = arith.constant 0 : index
      %27 = vector.load %arg6[%c0_19, %c0_20] : memref<8x1xf32, #tpu.memory_space<vmem>>, vector<8x1xf32>
      %28 = math.sqrt %27 : vector<8x1xf32>
      %c0_21 = arith.constant 0 : index
      %c0_22 = arith.constant 0 : index
      %29 = vector.load %arg7[%c0_21, %c0_22] : memref<8x1xf32, #tpu.memory_space<vmem>>, vector<8x1xf32>
      %30 = math.sqrt %29 : vector<8x1xf32>
      %cst_23 = arith.constant 1.000000e+00 : f32
      %31 = vector.broadcast %cst_23 : f32 to vector<8x1xf32>
      %32 = arith.addf %31, %28 : vector<8x1xf32>
      %33 = arith.subf %32, %30 : vector<8x1xf32>
      %cst_24 = arith.constant 0.000000e+00 : f32
      %34 = vector.broadcast %cst_24 : f32 to vector<8x1xf32>
      %35 = arith.maximumf %33, %34 : vector<8x1xf32>
      %36 = vector.shape_cast %35 : vector<8x1xf32> to vector<1x8x1xf32>
      %cst_25 = arith.constant dense<0.000000e+00> : vector<1xf32>
      %37 = vector.multi_reduction <add>, %36, %cst_25 [1, 2] : vector<1x8x1xf32> to vector<1xf32>
      %38 = vector.shape_cast %37 : vector<1xf32> to vector<1x1x1xf32>
      %39 = vector.extract %38[0, 0, 0] : f32 from vector<1x1x1xf32>
      %40 = vector.broadcast %39 : f32 to vector<1x8x128xf32>
      %c0_26 = arith.constant 0 : index
      %c0_27 = arith.constant 0 : index
      %c0_28 = arith.constant 0 : index
      %41 = vector.load %arg5[%c0_26, %c0_27, %c0_28] : memref<1x8x128xf32, #tpu.memory_space<vmem>>, vector<1x8x128xf32>
      tpu.vector_store %arg5[%c0_26, %c0_27, %c0_28], %40 {strides = array<i32>} : memref<1x8x128xf32, #tpu.memory_space<vmem>>, vector<1x8x128xf32>,
    } else {
    }
    return
  }
  func.func @transform_0(%arg0: i32, %arg1: i32) -> (i32, i32) {
    %c0_i32 = arith.constant 0 : i32
    return %arg0, %arg1 : i32, i32
  }
  func.func @transform_1(%arg0: i32, %arg1: i32) -> (i32, i32) {
    %c0_i32 = arith.constant 0 : i32
    return %arg0, %arg1 : i32, i32
  }
  func.func @transform_2(%arg0: i32, %arg1: i32) -> (i32, i32) {
    %c0_i32 = arith.constant 0 : i32
    return %arg0, %arg1 : i32, i32
  }
  func.func @transform_3(%arg0: i32, %arg1: i32) -> (i32, i32, i32) {
    %c0_i32 = arith.constant 0 : i32
    %c0_i32_0 = arith.constant 0 : i32
    %c0_i32_1 = arith.constant 0 : i32
    return %arg0, %c0_i32, %c0_i32_0 : i32, i32, i32
  }
}

</mosaic_0001>

<bundles_post_ra>
// kernel: triplet_loss.1
= control target key start
LH: loop header
LB: loop body
LE: loop exit
PB: predicated region body
PF: predicated region fallthrough
CT: control target
= control target key end

     0   :  { %8 = vsyncpa [#allocation5], 0  ;;  %s259_s0 = inlined_call_operand.hbm [shape: f32[8,128], index: 0, kind: input, shape index: {}]   ;;  %s260_s1 = inlined_call_operand.hbm [shape: f32[8,128], index: 1, kind: input, shape index: {}]   ;;  %s261_s2 = inlined_call_operand.hbm [shape: f32[8,128], index: 2, kind: input, shape index: {}]   ;;  %s262_s3 = inlined_call_operand.vmem [shape: f32[1,8,128], index: 3, kind: output, shape index: {}]  }
   0x1   :  { %9 = vsyncpa [#allocation7], 0  ;;  %s26_s14 = sshll.u32 %s260_s1, 4  ;;  %s218_s15 = smov [#allocation6]   ;;  %s27_s14 = int_to_ptr.hbm [resolvable:$true] %s26_s14 }
   0x2   :  { %s28_s16 = sshll.u32 %s218_s15, 4  ;;  %s15_s19 = sshll.u32 %s259_s0, 4  ;;  %s29_s16 = int_to_ptr.vmem [resolvable:$true] %s28_s16  ;;  %s16_s19 = int_to_ptr.hbm [resolvable:$true] %s15_s19 }
   0x3   :  { %31 = dma.hbm_to_vmem [thread:$0]  %s27_s14, 128, %s29_s16, [#allocation7]  }
   0x4   :  { %s219_s20 = smov [#allocation4]   ;;  %s37_s24 = sshll.u32 %s261_s2, 4  ;;  %s38_s24 = int_to_ptr.hbm [resolvable:$true] %s37_s24 }
   0x5   :  { %s17_s21 = sshll.u32 %s219_s20, 4  ;;  %s220_s1 = smov [#allocation8]   ;;  %s18_s21 = int_to_ptr.vmem [resolvable:$true] %s17_s21 }
   0x6   :  { %20 = dma.hbm_to_vmem [thread:$0]  %s16_s19, 128, %s18_s21, [#allocation5]  }
   0x7   :  { %s39_s25 = sshll.u32 %s220_s1, 4  ;;  %s40_s25 = int_to_ptr.vmem [resolvable:$true] %s39_s25 }
   0x8   :  { %42 = dma.hbm_to_vmem [thread:$0]  %s38_s24, 128, %s40_s25, [#allocation7]  }
   0x9   :  { %214 = dma.done.wait [#allocation5], 128  }
   0xa   :  { %215 = vsyncadd [#allocation5], 4294967168 }
   0xb   :  { %216 = dma.done.wait [#allocation7], 256  }
   0xc   :  { %217 = vsyncadd [#allocation7], 4294967040  ;;  %vm59_vm0 = vcmask 7168   ;;  %v221_v0 = vmov 0.0   ;;  %v62_v1 = vld [vmem:[#allocation4] sm:$0xff]  ;;  %v63_v2 = vld [vmem:[#allocation6] sm:$0xff] }
   0xd   :  { %60 = vst.msk [vmem:[#allocation2] sm:$0xff] %vm59_vm0, %v221_v0  ;;  %v66_v3 = vld [vmem:[#allocation8] sm:$0xff]  ;;  %v64_v4 = vsub.f32 %v62_v1, %v63_v2 }
   0xe   :  { %61 = vst.msk [vmem:[#allocation3] sm:$0xff] %vm59_vm0, %v221_v0  ;;  %v67_v6 = vsub.f32 %v62_v1, %v66_v3 }
   0xf   :  { %v65_v5 = vadd.f32 1e-06, %v64_v4 }
  0x10   :  { %v68_v8 = vadd.f32 1e-06, %v67_v6 }
  0x11   :  { %v70_v7 = vmul.f32 %v65_v5, %v65_v5 }
  0x12   :  { %v77_v9 = vmul.f32 %v68_v8, %v68_v8 }
  0x13   :  { %71 = vadd.xlane.f32.xlu0 %v70_v7 }
  0x14   :  { %v69_v10 = vld [vmem:[#allocation2] sm:$0xff] }
  0x15   :  { %v76_v13 = vld [vmem:[#allocation3] sm:$0xff] }
  0x1b   :  { %78 = vadd.xlane.f32.xlu0 %v77_v9 }
  0x86   :  { %v72_v11 = vpop.xlane.xlu0 %71 }
  0x87   :  { %v73_v12 = vadd.f32 %v72_v11, %v69_v10 }
  0x89   :  { %75 = vst.msk [vmem:[#allocation2] sm:$0xff] %vm59_vm0, %v73_v12 }
  0x8e   :  { %v79_v14 = vpop.xlane.xlu0 %78 }
  0x8f   :  { %v80_v15 = vadd.f32 %v79_v14, %v76_v13 }
  0x90   :  { %v85_v16 = vld [vmem:[#allocation2] sm:$0xff] }
  0x91   :  { %81 = vst.msk [vmem:[#allocation3] sm:$0xff] %vm59_vm0, %v80_v15  ;;  %138 = vrsqrt.f32 %v85_v16  ;;  %vm93_vm1 = vcmp.eq.f32.partialorder %v85_v16, inf  ;;  %v96_v31 = vand.u32 2147483648, %v85_v16  ;;  %vm95_vm2 = vcmp.eq.f32.partialorder %v85_v16, 0.0 }
  0x97   :  { %v139_v17 = vpop.eup %138 }
  0x98   :  { %v87_v18 = vmul.f32 %v139_v17, %v85_v16  ;;  %v98_v19 = vld [vmem:[#allocation3] sm:$0xff] }
  0x99   :  { %140 = vrsqrt.f32 %v98_v19  ;;  %vm106_vm3 = vcmp.eq.f32.partialorder %v98_v19, inf  ;;  %v109_v35 = vand.u32 2147483648, %v98_v19  ;;  %vm108_vm4 = vcmp.eq.f32.partialorder %v98_v19, 0.0 }
  0x9a   :  { %v88_v20 = vmul.f32 %v139_v17, %v87_v18 }
  0x9c   :  { %v89_v21 = vmul.f32 0.5, %v88_v20 }
  0x9e   :  { %v90_v22 = vsub.f32 1.5, %v89_v21 }
  0x9f   :  { %v141_v23 = vpop.eup %140 }
  0xa0   :  { %v91_v24 = vmul.f32 %v139_v17, %v90_v22  ;;  %v100_v25 = vmul.f32 %v141_v23, %v98_v19 }
  0xa2   :  { %v92_v26 = vmul.f32 %v91_v24, %v85_v16  ;;  %v101_v27 = vmul.f32 %v141_v23, %v100_v25 }
  0xa4   :  { %v102_v28 = vmul.f32 0.5, %v101_v27  ;;  %v94_v29 = vsel %vm93_vm1, %v85_v16, %v92_v26 }
  0xa5   :  { %v97_v33 = vsel %vm95_vm2, %v96_v31, %v94_v29 }
  0xa6   :  { %v103_v30 = vsub.f32 1.5, %v102_v28  ;;  %v111_v37 = vadd.f32 1.0, %v97_v33 }
  0xa8   :  { %v104_v32 = vmul.f32 %v141_v23, %v103_v30 }
  0xaa   :  { %v105_v34 = vmul.f32 %v104_v32, %v98_v19 }
  0xac   :  { %v107_v36 = vsel %vm106_vm3, %v98_v19, %v105_v34 }
  0xad   :  { %v110_v38 = vsel %vm108_vm4, %v109_v35, %v107_v36 }
  0xae   :  { %v112_v39 = vsub.f32 %v111_v37, %v110_v38 }
  0xb0   :  { %v113_v40 = vmax.f32 %v112_v39, 0.0 }
  0xb2   :  { %v114_v41 = vsel %vm59_vm0, %v113_v40, 0.0 }
  0xb3   :  { %115 = vadd.xlane.f32.xlu1 %v114_v41 }
 0x126   :  { %v116_v42 = vpop.xlane.xlu1 %115 }
 0x127   :  { %v117_v43 = vrot.slane %v116_v42, 4 }
 0x129   :  { %v118_v44 = vadd.f32 %v117_v43, %v116_v42 }
 0x12b   :  { %v119_v45 = vrot.slane %v118_v44, 2 }
 0x12d   :  { %v120_v46 = vadd.f32 %v119_v45, %v118_v44 }
 0x12f   :  { %v121_v47 = vrot.slane %v120_v46, 1 }
 0x131   :  { %v122_v48 = vadd.f32 %v121_v47, %v120_v46 }
 0x133   :  { %132 = vpush %v122_v48 }
 0x164   :  { %s133_s0 = spop %132 }
 0x165   :  { %v124_v49 = vstv %s133_s0 }
 0x166   :  { %125 = vst [vmem:[%s262_s3] sm:$0xff] %v124_v49 }
 0x167   :  { %130 = vsyncpa [#allocation5], 1 }
 0x168   :  { %131 = vsyncpa [#allocation7], 1 }

</bundles_post_ra>
